<compile_context>
chip_gen: v6e
topology: v6e:2x2x1
jax: 0.10.0
libtpu: 0.0.40
codegen_flags: <defaults>
</compile_context>

<pallas_src>
import jax
import jax.numpy as jnp
from jax.experimental import pallas as pl
from jax.experimental.pallas import tpu as pltpu


PAD = 128        # lane-padded feature width
N_LAYERS = 8     # 4 encoder + 4 decoder linear layers


# ----------------------------------------------------------------------------
# Kernel: one (TB, 128) batch tile through the full encoder+decoder chain.
# Weights/biases are VMEM-resident packed stacks.
# ----------------------------------------------------------------------------
def autoencoder_kernel(x_ref, w_ref, b_ref, enc_ref, dec_ref):
    # bf16 -> f32 at the load boundary; all in-kernel math is f32.
    h = x_ref[...].astype(jnp.float32)

    def linear(h, layer):
        return (
            jnp.dot(h, w_ref[layer], preferred_element_type=jnp.float32)
            + b_ref[pl.ds(layer, 1), :]
        )

    # ---- encoder ----
    for layer in range(3):                       # Linear + ReLU (Dropout = identity)
        h = jnp.maximum(linear(h, layer), 0.0)
    encoded = linear(h, 3)                       # Linear(16, enc)  (lane-padded)
    enc_ref[...] = encoded.astype(enc_ref.dtype)

    # ---- decoder ----
    h = encoded
    for layer in range(4, 7):
        h = jnp.maximum(linear(h, layer), 0.0)
    logits = linear(h, 7)                        # Linear(64, D)
    # Sigmoid: exp and the approximate reciprocal both ride the (idle) EUP slot.
    sig = pl.reciprocal(1.0 + jnp.exp(-logits), approx=True)
    dec_ref[...] = sig.astype(dec_ref.dtype)


# ----------------------------------------------------------------------------
# Wrapper: lane-pad features to 128, tile the batch, double-buffered pipeline.
# ----------------------------------------------------------------------------
def autoencoder_forward(x, w_stack, b_stack, encoding_dim, tb=512):
    """x: (B, D).  w_stack: (8, 128, 128) f32 padded weights stored as (in, out).
    b_stack: (8, 128) f32 padded biases.
    Returns (encoded (B, encoding_dim) f32, decoded (B, D) f32)."""
    B, D = x.shape
    pad = w_stack.shape[-1]
    assert D <= pad and encoding_dim <= pad

    # Batch tile: multiple of 16 (bf16 sublane packing). Shrink for tiny batches.
    if B <= tb:
        tb = max(16, -(-B // 16) * 16)
    b_padded = -(-B // tb) * tb

    # Lane-pad features to 128 and batch to the tile multiple; bf16 at the HBM boundary.
    x_p = jnp.zeros((b_padded, pad), jnp.bfloat16).at[:B, :D].set(
        x.astype(jnp.bfloat16))

    grid = (b_padded // tb,)
    enc_p, dec_p = pl.pallas_call(
        autoencoder_kernel,
        out_shape=(
            jax.ShapeDtypeStruct((b_padded, pad), jnp.float32),   # encoded (padded)
            jax.ShapeDtypeStruct((b_padded, pad), jnp.bfloat16),  # decoded (padded)
        ),
        grid_spec=pltpu.PrefetchScalarGridSpec(
            num_scalar_prefetch=0,
            grid=grid,
            in_specs=[
                pl.BlockSpec((tb, pad), lambda i: (i, 0)),                # x tile
                pl.BlockSpec((N_LAYERS, pad, pad), lambda i: (0, 0, 0)),  # weights (resident)
                pl.BlockSpec((N_LAYERS, pad), lambda i: (0, 0)),          # biases  (resident)
            ],
            out_specs=[
                pl.BlockSpec((tb, pad), lambda i: (i, 0)),
                pl.BlockSpec((tb, pad), lambda i: (i, 0)),
            ],
        ),
        compiler_params=pltpu.CompilerParams(
            dimension_semantics=("parallel",),   # shard batch tiles across TCs on v7x
        ),
    )(x_p, w_stack, b_stack)

    encoded = enc_p[:B, :encoding_dim]
    decoded = dec_p[:B, :D].astype(jnp.float32)
    return encoded, decoded


# ----------------------------------------------------------------------------
# Deterministic parameter init (PyTorch nn.Linear-like uniform), packed + padded.
# ----------------------------------------------------------------------------
def make_params(key, input_dim, encoding_dim=2, pad=PAD):
    dims = [
        (input_dim, 64), (64, 32), (32, 16), (16, encoding_dim),   # encoder
        (encoding_dim, 16), (16, 32), (32, 64), (64, input_dim),   # decoder
    ]
    keys = jax.random.split(key, len(dims))
    w_stack = jnp.zeros((N_LAYERS, pad, pad), jnp.float32)
    b_stack = jnp.zeros((N_LAYERS, pad), jnp.float32)
    ws, bs = [], []
    for layer, (k, (fi, fo)) in enumerate(zip(keys, dims)):
        kw, kb = jax.random.split(k)
        bound = 1.0 / (fi ** 0.5)
        # Stored as (in, out) so the kernel does y = x @ W + b  (== x @ W_pt.T + b)
        w = jax.random.uniform(kw, (fi, fo), jnp.float32, -bound, bound)
        b = jax.random.uniform(kb, (fo,), jnp.float32, -bound, bound)
        ws.append(w)
        bs.append(b)
        # Zero padding keeps padded lanes exactly 0 through the ReLU chain.
        w_stack = w_stack.at[layer, :fi, :fo].set(w)
        b_stack = b_stack.at[layer, :fo].set(b)
    return w_stack, b_stack, ws, bs


# ----------------------------------------------------------------------------
# Pure-JAX reference (unpadded weights) for sanity check
# ----------------------------------------------------------------------------
def reference_forward(x, ws, bs):
    h = x
    for layer in range(3):
        h = jax.nn.relu(h @ ws[layer] + bs[layer])
    encoded = h @ ws[3] + bs[3]
    h = encoded
    for layer in range(4, 7):
        h = jax.nn.relu(h @ ws[layer] + bs[layer])
    decoded = jax.nn.sigmoid(h @ ws[7] + bs[7])
    return encoded, decoded


if __name__ == "__main__":
    key = jax.random.PRNGKey(0)
    k_x, k_p = jax.random.split(key)

    batch = 8
    input_dim = 32       # stand-in for the one-hot encoded feature width
    encoding_dim = 2

    # One-hot-ish synthetic input (values in {0,1}, exactly representable in bf16).
    x = (jax.random.uniform(k_x, (batch, input_dim)) > 0.5).astype(jnp.float32)

    w_stack, b_stack, ws, bs = make_params(k_p, input_dim, encoding_dim)

    encoded, decoded = autoencoder_forward(x, w_stack, b_stack, encoding_dim)
    jax.block_until_ready((encoded, decoded))

    enc_ref, dec_ref = reference_forward(x, ws, bs)
    assert encoded.shape == (batch, encoding_dim)
    assert decoded.shape == (batch, input_dim)
    assert jnp.allclose(encoded, enc_ref, atol=1e-4, rtol=1e-4), (
        float(jnp.max(jnp.abs(encoded - enc_ref))))
    # decoded passes through a bf16 store + approximate-reciprocal sigmoid.
    assert jnp.allclose(decoded, dec_ref, atol=2e-2, rtol=2e-2), (
        float(jnp.max(jnp.abs(decoded - dec_ref))))

    print("KERNEL_OK")
</pallas_src>

<mosaic_0001>
module attributes {stable_mosaic.version = 11 : i64} {
  func.func @autoencoder_kernel(%arg0: i32, %arg1: memref<16x128xbf16, #tpu.memory_space<vmem>>, %arg2: memref<8x128x128xf32, #tpu.memory_space<vmem>>, %arg3: memref<8x128xf32, #tpu.memory_space<vmem>>, %arg4: memref<16x128xf32, #tpu.memory_space<vmem>>, %arg5: memref<16x128xbf16, #tpu.memory_space<vmem>>) attributes {dimension_semantics = [#tpu.dimension_semantics<parallel>], iteration_bounds = array<i64: 1>, scalar_prefetch = 0 : i64, scratch_operands = 0 : i64, tpu.core_type = #tpu.core_type<tc>, window_params = [{transform_indices = @transform_0, window_bounds = array<i64: 16, 128>}, {pipeline_mode = #tpu.pipeline_mode<synchronous>, transform_indices = @transform_1, window_bounds = array<i64: 8, 128, 128>}, {pipeline_mode = #tpu.pipeline_mode<synchronous>, transform_indices = @transform_2, window_bounds = array<i64: 8, 128>}, {transform_indices = @transform_3, window_bounds = array<i64: 16, 128>}, {transform_indices = @transform_4, window_bounds = array<i64: 16, 128>}]} {
    %c0 = arith.constant 0 : index
    %c0_0 = arith.constant 0 : index
    %0 = vector.load %arg1[%c0, %c0_0] : memref<16x128xbf16, #tpu.memory_space<vmem>>, vector<16x128xbf16>
    %1 = arith.extf %0 : vector<16x128xbf16> to vector<16x128xf32>
    %c0_1 = arith.constant 0 : index
    %c0_2 = arith.constant 0 : index
    %c0_3 = arith.constant 0 : index
    %2 = vector.load %arg2[%c0_1, %c0_2, %c0_3] : memref<8x128x128xf32, #tpu.memory_space<vmem>>, vector<1x128x128xf32>
    %3 = vector.shape_cast %2 : vector<1x128x128xf32> to vector<128x128xf32>
    %cst = arith.constant dense<0.000000e+00> : vector<16x128xf32>
    %4 = tpu.matmul %1, %3, %cst {dimension_numbers = #tpu.dot_dimension_numbers<[1], [0], [0], [1], [0, 0, 1, 1], [], []>} : vector<16x128xf32>, vector<128x128xf32>, vector<16x128xf32> -> vector<16x128xf32>
    %c0_4 = arith.constant 0 : index
    %c0_5 = arith.constant 0 : index
    %5 = vector.load %arg3[%c0_4, %c0_5] : memref<8x128xf32, #tpu.memory_space<vmem>>, vector<1x128xf32>
    %6 = vector.broadcast %5 : vector<1x128xf32> to vector<16x128xf32>
    %7 = arith.addf %4, %6 : vector<16x128xf32>
    %cst_6 = arith.constant 0.000000e+00 : f32
    %8 = vector.broadcast %cst_6 : f32 to vector<16x128xf32>
    %9 = arith.maximumf %7, %8 : vector<16x128xf32>
    %c1 = arith.constant 1 : index
    %c0_7 = arith.constant 0 : index
    %c0_8 = arith.constant 0 : index
    %10 = vector.load %arg2[%c1, %c0_7, %c0_8] : memref<8x128x128xf32, #tpu.memory_space<vmem>>, vector<1x128x128xf32>
    %11 = vector.shape_cast %10 : vector<1x128x128xf32> to vector<128x128xf32>
    %cst_9 = arith.constant dense<0.000000e+00> : vector<16x128xf32>
    %12 = tpu.matmul %9, %11, %cst_9 {dimension_numbers = #tpu.dot_dimension_numbers<[1], [0], [0], [1], [0, 0, 1, 1], [], []>} : vector<16x128xf32>, vector<128x128xf32>, vector<16x128xf32> -> vector<16x128xf32>
    %c1_10 = arith.constant 1 : index
    %c0_11 = arith.constant 0 : index
    %13 = vector.load %arg3[%c1_10, %c0_11] : memref<8x128xf32, #tpu.memory_space<vmem>>, vector<1x128xf32>
    %14 = vector.broadcast %13 : vector<1x128xf32> to vector<16x128xf32>
    %15 = arith.addf %12, %14 : vector<16x128xf32>
    %cst_12 = arith.constant 0.000000e+00 : f32
    %16 = vector.broadcast %cst_12 : f32 to vector<16x128xf32>
    %17 = arith.maximumf %15, %16 : vector<16x128xf32>
    %c2 = arith.constant 2 : index
    %c0_13 = arith.constant 0 : index
    %c0_14 = arith.constant 0 : index
    %18 = vector.load %arg2[%c2, %c0_13, %c0_14] : memref<8x128x128xf32, #tpu.memory_space<vmem>>, vector<1x128x128xf32>
    %19 = vector.shape_cast %18 : vector<1x128x128xf32> to vector<128x128xf32>
    %cst_15 = arith.constant dense<0.000000e+00> : vector<16x128xf32>
    %20 = tpu.matmul %17, %19, %cst_15 {dimension_numbers = #tpu.dot_dimension_numbers<[1], [0], [0], [1], [0, 0, 1, 1], [], []>} : vector<16x128xf32>, vector<128x128xf32>, vector<16x128xf32> -> vector<16x128xf32>
    %c2_16 = arith.constant 2 : index
    %c0_17 = arith.constant 0 : index
    %21 = vector.load %arg3[%c2_16, %c0_17] : memref<8x128xf32, #tpu.memory_space<vmem>>, vector<1x128xf32>
    %22 = vector.broadcast %21 : vector<1x128xf32> to vector<16x128xf32>
    %23 = arith.addf %20, %22 : vector<16x128xf32>
    %cst_18 = arith.constant 0.000000e+00 : f32
    %24 = vector.broadcast %cst_18 : f32 to vector<16x128xf32>
    %25 = arith.maximumf %23, %24 : vector<16x128xf32>
    %c3 = arith.constant 3 : index
    %c0_19 = arith.constant 0 : index
    %c0_20 = arith.constant 0 : index
    %26 = vector.load %arg2[%c3, %c0_19, %c0_20] : memref<8x128x128xf32, #tpu.memory_space<vmem>>, vector<1x128x128xf32>
    %27 = vector.shape_cast %26 : vector<1x128x128xf32> to vector<128x128xf32>
    %cst_21 = arith.constant dense<0.000000e+00> : vector<16x128xf32>
    %28 = tpu.matmul %25, %27, %cst_21 {dimension_numbers = #tpu.dot_dimension_numbers<[1], [0], [0], [1], [0, 0, 1, 1], [], []>} : vector<16x128xf32>, vector<128x128xf32>, vector<16x128xf32> -> vector<16x128xf32>
    %c3_22 = arith.constant 3 : index
    %c0_23 = arith.constant 0 : index
    %29 = vector.load %arg3[%c3_22, %c0_23] : memref<8x128xf32, #tpu.memory_space<vmem>>, vector<1x128xf32>
    %30 = vector.broadcast %29 : vector<1x128xf32> to vector<16x128xf32>
    %31 = arith.addf %28, %30 : vector<16x128xf32>
    %c0_24 = arith.constant 0 : index
    %c0_25 = arith.constant 0 : index
    %32 = vector.load %arg4[%c0_24, %c0_25] : memref<16x128xf32, #tpu.memory_space<vmem>>, vector<16x128xf32>
    tpu.vector_store %arg4[%c0_24, %c0_25], %31 {strides = array<i32>} : memref<16x128xf32, #tpu.memory_space<vmem>>, vector<16x128xf32>,
    %c4 = arith.constant 4 : index
    %c0_26 = arith.constant 0 : index
    %c0_27 = arith.constant 0 : index
    %33 = vector.load %arg2[%c4, %c0_26, %c0_27] : memref<8x128x128xf32, #tpu.memory_space<vmem>>, vector<1x128x128xf32>
    %34 = vector.shape_cast %33 : vector<1x128x128xf32> to vector<128x128xf32>
    %cst_28 = arith.constant dense<0.000000e+00> : vector<16x128xf32>
    %35 = tpu.matmul %31, %34, %cst_28 {dimension_numbers = #tpu.dot_dimension_numbers<[1], [0], [0], [1], [0, 0, 1, 1], [], []>} : vector<16x128xf32>, vector<128x128xf32>, vector<16x128xf32> -> vector<16x128xf32>
    %c4_29 = arith.constant 4 : index
    %c0_30 = arith.constant 0 : index
    %36 = vector.load %arg3[%c4_29, %c0_30] : memref<8x128xf32, #tpu.memory_space<vmem>>, vector<1x128xf32>
    %37 = vector.broadcast %36 : vector<1x128xf32> to vector<16x128xf32>
    %38 = arith.addf %35, %37 : vector<16x128xf32>
    %cst_31 = arith.constant 0.000000e+00 : f32
    %39 = vector.broadcast %cst_31 : f32 to vector<16x128xf32>
    %40 = arith.maximumf %38, %39 : vector<16x128xf32>
    %c5 = arith.constant 5 : index
    %c0_32 = arith.constant 0 : index
    %c0_33 = arith.constant 0 : index
    %41 = vector.load %arg2[%c5, %c0_32, %c0_33] : memref<8x128x128xf32, #tpu.memory_space<vmem>>, vector<1x128x128xf32>
    %42 = vector.shape_cast %41 : vector<1x128x128xf32> to vector<128x128xf32>
    %cst_34 = arith.constant dense<0.000000e+00> : vector<16x128xf32>
    %43 = tpu.matmul %40, %42, %cst_34 {dimension_numbers = #tpu.dot_dimension_numbers<[1], [0], [0], [1], [0, 0, 1, 1], [], []>} : vector<16x128xf32>, vector<128x128xf32>, vector<16x128xf32> -> vector<16x128xf32>
    %c5_35 = arith.constant 5 : index
    %c0_36 = arith.constant 0 : index
    %44 = vector.load %arg3[%c5_35, %c0_36] : memref<8x128xf32, #tpu.memory_space<vmem>>, vector<1x128xf32>
    %45 = vector.broadcast %44 : vector<1x128xf32> to vector<16x128xf32>
    %46 = arith.addf %43, %45 : vector<16x128xf32>
    %cst_37 = arith.constant 0.000000e+00 : f32
    %47 = vector.broadcast %cst_37 : f32 to vector<16x128xf32>
    %48 = arith.maximumf %46, %47 : vector<16x128xf32>
    %c6 = arith.constant 6 : index
    %c0_38 = arith.constant 0 : index
    %c0_39 = arith.constant 0 : index
    %49 = vector.load %arg2[%c6, %c0_38, %c0_39] : memref<8x128x128xf32, #tpu.memory_space<vmem>>, vector<1x128x128xf32>
    %50 = vector.shape_cast %49 : vector<1x128x128xf32> to vector<128x128xf32>
    %cst_40 = arith.constant dense<0.000000e+00> : vector<16x128xf32>
    %51 = tpu.matmul %48, %50, %cst_40 {dimension_numbers = #tpu.dot_dimension_numbers<[1], [0], [0], [1], [0, 0, 1, 1], [], []>} : vector<16x128xf32>, vector<128x128xf32>, vector<16x128xf32> -> vector<16x128xf32>
    %c6_41 = arith.constant 6 : index
    %c0_42 = arith.constant 0 : index
    %52 = vector.load %arg3[%c6_41, %c0_42] : memref<8x128xf32, #tpu.memory_space<vmem>>, vector<1x128xf32>
    %53 = vector.broadcast %52 : vector<1x128xf32> to vector<16x128xf32>
    %54 = arith.addf %51, %53 : vector<16x128xf32>
    %cst_43 = arith.constant 0.000000e+00 : f32
    %55 = vector.broadcast %cst_43 : f32 to vector<16x128xf32>
    %56 = arith.maximumf %54, %55 : vector<16x128xf32>
    %c7 = arith.constant 7 : index
    %c0_44 = arith.constant 0 : index
    %c0_45 = arith.constant 0 : index
    %57 = vector.load %arg2[%c7, %c0_44, %c0_45] : memref<8x128x128xf32, #tpu.memory_space<vmem>>, vector<1x128x128xf32>
    %58 = vector.shape_cast %57 : vector<1x128x128xf32> to vector<128x128xf32>
    %cst_46 = arith.constant dense<0.000000e+00> : vector<16x128xf32>
    %59 = tpu.matmul %56, %58, %cst_46 {dimension_numbers = #tpu.dot_dimension_numbers<[1], [0], [0], [1], [0, 0, 1, 1], [], []>} : vector<16x128xf32>, vector<128x128xf32>, vector<16x128xf32> -> vector<16x128xf32>
    %c7_47 = arith.constant 7 : index
    %c0_48 = arith.constant 0 : index
    %60 = vector.load %arg3[%c7_47, %c0_48] : memref<8x128xf32, #tpu.memory_space<vmem>>, vector<1x128xf32>
    %61 = vector.broadcast %60 : vector<1x128xf32> to vector<16x128xf32>
    %62 = arith.addf %59, %61 : vector<16x128xf32>
    %cst_49 = arith.constant 0.000000e+00 : f32
    %63 = vector.broadcast %cst_49 : f32 to vector<16x128xf32>
    %64 = arith.subf %63, %62 : vector<16x128xf32>
    %65 = math.exp %64 : vector<16x128xf32>
    %cst_50 = arith.constant 1.000000e+00 : f32
    %66 = vector.broadcast %cst_50 : f32 to vector<16x128xf32>
    %67 = arith.addf %66, %65 : vector<16x128xf32>
    %68 = tpu.reciprocal %67 {approx = true} : vector<16x128xf32> -> vector<16x128xf32>
    %69 = arith.truncf %68 : vector<16x128xf32> to vector<16x128xbf16>
    %c0_51 = arith.constant 0 : index
    %c0_52 = arith.constant 0 : index
    %70 = vector.load %arg5[%c0_51, %c0_52] : memref<16x128xbf16, #tpu.memory_space<vmem>>, vector<16x128xbf16>
    tpu.vector_store %arg5[%c0_51, %c0_52], %69 {strides = array<i32>} : memref<16x128xbf16, #tpu.memory_space<vmem>>, vector<16x128xbf16>,
    return
  }
  func.func @transform_0(%arg0: i32) -> (i32, i32) {
    %c0_i32 = arith.constant 0 : i32
    %c0_i32_0 = arith.constant 0 : i32
    return %arg0, %c0_i32 : i32, i32
  }
  func.func @transform_1(%arg0: i32) -> (i32, i32, i32) {
    %c0_i32 = arith.constant 0 : i32
    %c0_i32_0 = arith.constant 0 : i32
    %c0_i32_1 = arith.constant 0 : i32
    %c0_i32_2 = arith.constant 0 : i32
    return %c0_i32, %c0_i32_0, %c0_i32_1 : i32, i32, i32
  }
  func.func @transform_2(%arg0: i32) -> (i32, i32) {
    %c0_i32 = arith.constant 0 : i32
    %c0_i32_0 = arith.constant 0 : i32
    %c0_i32_1 = arith.constant 0 : i32
    return %c0_i32, %c0_i32_0 : i32, i32
  }
  func.func @transform_3(%arg0: i32) -> (i32, i32) {
    %c0_i32 = arith.constant 0 : i32
    %c0_i32_0 = arith.constant 0 : i32
    return %arg0, %c0_i32 : i32, i32
  }
  func.func @transform_4(%arg0: i32) -> (i32, i32) {
    %c0_i32 = arith.constant 0 : i32
    %c0_i32_0 = arith.constant 0 : i32
    return %arg0, %c0_i32 : i32, i32
  }
}

</mosaic_0001>

<bundles_post_ra>
// kernel: tpu_custom_call.1
= control target key start
LH: loop header
LB: loop body
LE: loop exit
PB: predicated region body
PF: predicated region fallthrough
CT: control target
= control target key end

     0   :  { %10 = vsyncpa [#allocation3], 0  ;;  %s1539_s0 = inlined_call_operand.hbm [shape: bf16[16,128], index: 0, kind: input, shape index: {}]   ;;  %s1540_s1 = inlined_call_operand.hbm [shape: f32[8,128,128], index: 1, kind: input, shape index: {}]   ;;  %s1541_s2 = inlined_call_operand.hbm [shape: f32[8,128], index: 2, kind: input, shape index: {}]   ;;  %s1542_s3 = inlined_call_operand.hbm [shape: f32[16,128], index: 3, kind: output, shape index: {0}]   ;;  %s1543_s4 = inlined_call_operand.hbm [shape: bf16[16,128], index: 4, kind: output, shape index: {1}]  }
   0x1   :  { %11 = vsyncpa [#allocation6], 0 }
   0x2   :  { %12 = vsyncpa [#allocation4], 0 }
   0x3   :  { %13 = vsyncpa [#allocation10], 0  ;;  %s1474_s15 = smov [#allocation5]  }
   0x4   :  { %s31_s16 = sshll.u32 %s1474_s15, 4  ;;  %s32_s16 = int_to_ptr.vmem [resolvable:$true] %s31_s16 }
   0x5   :  { %s1374_s17 = scalar_lea.vmem %s32_s16, 16384  ;;  %p1379_p1 = scmp.lt.s32.totalorder %s32_s16, %s32_s16 }
   0x6   :  { %p1375_p0 = scmp.ne.s32.totalorder %s32_s16, %s1374_s17  ;;  %p1380_p2 = scmp.lt.s32.totalorder %s1374_s17, %s1374_s17 }
   0x8   :  { %p1381_p3 = por %p1380_p2, %p1379_p1 }
   0xa   :  { %p1382_p4 = pnand %p1381_p3, %p1375_p0 }
   0xc   :  { %1385 = shalt.err (!%p1382_p4)
}
   0xd   :  { %s1475_s18 = smov 128   ;;  %s1476_s19 = smov 8  }
   0xe   :  { %37 = dma.hbm_to_vmem [thread:$0]  %s1540_s1, 16384, %s32_s16, [#allocation6], %s1475_s18, %s1475_s18, %s1476_s19  }
   0xf   :  { %s1477_s22 = smov [#allocation2]  }
  0x10   :  { %s19_s23 = sshll.u32 %s1477_s22, 4  ;;  %s20_s23 = int_to_ptr.vmem [resolvable:$true] %s19_s23 }
  0x11   :  { %s1394_s24 = scalar_lea.vmem %s20_s23, 128  ;;  %p1399_p6 = scmp.lt.s32.totalorder %s20_s23, %s20_s23 }
  0x12   :  { %p1395_p5 = scmp.ne.s32.totalorder %s20_s23, %s1394_s24  ;;  %p1400_p7 = scmp.lt.s32.totalorder %s1394_s24, %s1394_s24 }
  0x14   :  { %p1401_p8 = por %p1400_p7, %p1399_p6 }
  0x16   :  { %p1402_p9 = pnand %p1401_p8, %p1395_p5 }
  0x18   :  { %1405 = shalt.err (!%p1402_p9)
}
  0x19   :  { %s1478_s25 = smov 64   ;;  %s1479_s26 = smov 4  }
  0x1a   :  { %25 = dma.hbm_to_vmem [thread:$0]  %s1539_s0, 128, %s20_s23, [#allocation3], %s1478_s25, %s1478_s25, %s1479_s26  }
  0x1b   :  { %s1480_s1 = smov [#allocation7]  }
  0x1c   :  { %s44_s29 = sshll.u32 %s1480_s1, 4  ;;  %s45_s29 = int_to_ptr.vmem [resolvable:$true] %s44_s29 }
  0x1d   :  { %s1414_s30 = scalar_lea.vmem %s45_s29, 128  ;;  %p1419_p11 = scmp.lt.s32.totalorder %s45_s29, %s45_s29 }
  0x1e   :  { %p1415_p10 = scmp.ne.s32.totalorder %s45_s29, %s1414_s30  ;;  %p1420_p12 = scmp.lt.s32.totalorder %s1414_s30, %s1414_s30 }
  0x20   :  { %p1421_p13 = por %p1420_p12, %p1419_p11 }
  0x22   :  { %p1422_p0 = pnand %p1421_p13, %p1415_p10 }
  0x24   :  { %1425 = shalt.err (!%p1422_p0)
}
  0x25   :  { %47 = dma.hbm_to_vmem [thread:$0]  %s1541_s2, 128, %s45_s29, [#allocation6]  }
  0x26   :  { %1466 = dma.done.wait [#allocation3], 128  }
  0x27   :  { %1467 = vsyncadd [#allocation3], 4294967168 }
  0x28   :  { %1468 = dma.done.wait [#allocation6], 16512  }
  0x29   :  { %1469 = vsyncadd [#allocation6], 4294950784  ;;  %v76_v0 = vld [vmem:[#allocation5 + $0x78] sm:$0xff]  ;;  %v75_v1 = vld [vmem:[#allocation5 + $0x70] sm:$0xff]  ;;  %s1481_s0 = smov [#allocation8]  }
  0x2a   :  { %1069 = vmatprep.subr.mxu0 %v76_v0  ;;  %v74_v2 = vld [vmem:[#allocation5 + $0x68] sm:$0xff]  ;;  %v73_v3 = vld [vmem:[#allocation5 + $0x60] sm:$0xff]  ;;  %v1523_v4 = vld [vmem:[#allocation2] sm:$0xff]   ;;  %s875_s2 = sshll.u32 %s1481_s0, 4  ;;  %s876_s2 = int_to_ptr.vmem [resolvable:$true] %s875_s2 }
  0x2b   :  { %1070 = vmatpush3.msra.mxu0 %v76_v0  ;;  %v175_v5 = vld [vmem:[#allocation5 + $0xf8] sm:$0xff]  ;;  %v918_v7 = vunpack.c.l.bf16 %v1523_v4  ;;  %v174_v8 = vld [vmem:[#allocation5 + $0xf0] sm:$0xff]  ;;  %v173_v10 = vld [vmem:[#allocation5 + $0xe8] sm:$0xff]  ;;  %v919_v30 = vunpack.c.h.bf16 %v1523_v4  ;;  %s1426_s7 = scalar_lea.vmem %s876_s2, 256  ;;  %p1431_p2 = scmp.lt.s32.totalorder %s876_s2, %s876_s2 }
  0x2c   :  { %1071 = vmatprep.subr.mxu0 %v75_v1  ;;  %v72_v6 = vld [vmem:[#allocation5 + $0x58] sm:$0xff]  ;;  %1104 = vmatprep.subr.mxu1 %v175_v5  ;;  %v71_v9 = vld [vmem:[#allocation5 + $0x50] sm:$0xff]  ;;  %v70_v11 = vld [vmem:[#allocation5 + $0x48] sm:$0xff]  ;;  %p1427_p1 = scmp.ne.s32.totalorder %s876_s2, %s1426_s7  ;;  %p1432_p3 = scmp.lt.s32.totalorder %s1426_s7, %s1426_s7 }
  0x2d   :  { %1072 = vmatpush3.msra.mxu0 %v75_v1  ;;  %1105 = vmatpush3.msra.mxu1 %v175_v5  ;;  %v172_v12 = vld [vmem:[#allocation5 + $0xe0] sm:$0xff]  ;;  %v171_v14 = vld [vmem:[#allocation5 + $0xd8] sm:$0xff]  ;;  %v170_v16 = vld [vmem:[#allocation5 + $0xd0] sm:$0xff] }
  0x2e   :  { %1073 = vmatprep.subr.mxu0 %v74_v2  ;;  %1101 = vmatprep.mubr.f32.mxu0 %v918_v7  ;;  %v69_v13 = vld [vmem:[#allocation5 + $0x40] sm:$0xff]  ;;  %v68_v15 = vld [vmem:[#allocation5 + $0x38] sm:$0xff]  ;;  %v67_v17 = vld [vmem:[#allocation5 + $0x30] sm:$0xff]  ;;  %p1433_p4 = por %p1432_p3, %p1431_p2 }
  0x2f   :  { %1074 = vmatpush3.msra.mxu0 %v74_v2  ;;  %1106 = vmatprep.subr.mxu1 %v174_v8  ;;  %v169_v18 = vld [vmem:[#allocation5 + $0xc8] sm:$0xff]  ;;  %v168_v20 = vld [vmem:[#allocation5 + $0xc0] sm:$0xff]  ;;  %v167_v22 = vld [vmem:[#allocation5 + $0xb8] sm:$0xff] }
  0x30   :  { %1075 = vmatprep.subr.mxu0 %v73_v3  ;;  %1107 = vmatpush3.msra.mxu1 %v174_v8  ;;  %v66_v19 = vld [vmem:[#allocation5 + $0x28] sm:$0xff]  ;;  %v65_v21 = vld [vmem:[#allocation5 + $0x20] sm:$0xff]  ;;  %v64_v23 = vld [vmem:[#allocation5 + $0x18] sm:$0xff]  ;;  %p1434_p5 = pnand %p1433_p4, %p1427_p1 }
  0x31   :  { %1076 = vmatpush3.msra.mxu0 %v73_v3  ;;  %1108 = vmatprep.subr.mxu1 %v173_v10  ;;  %v166_v24 = vld [vmem:[#allocation5 + $0xb0] sm:$0xff]  ;;  %v165_v26 = vld [vmem:[#allocation5 + $0xa8] sm:$0xff]  ;;  %v164_v28 = vld [vmem:[#allocation5 + $0xa0] sm:$0xff] }
  0x32   :  { %1077 = vmatprep.subr.mxu0 %v72_v6  ;;  %1109 = vmatpush3.msra.mxu1 %v173_v10  ;;  %v63_v25 = vld [vmem:[#allocation5 + $0x10] sm:$0xff]  ;;  %v62_v27 = vld [vmem:[#allocation5 + $0x8] sm:$0xff]  ;;  %v61_v29 = vld [vmem:[#allocation5] sm:$0xff] }
  0x33   :  { %1078 = vmatpush3.msra.mxu0 %v72_v6  ;;  %1110 = vmatprep.subr.mxu1 %v172_v12  ;;  %v163_v31 = vld [vmem:[#allocation5 + $0x98] sm:$0xff]  ;;  %v162_v32 = vld [vmem:[#allocation5 + $0x90] sm:$0xff]  ;;  %v161_v33 = vld [vmem:[#allocation5 + $0x88] sm:$0xff] }
  0x34   :  { %1079 = vmatprep.subr.mxu0 %v71_v9  ;;  %1111 = vmatpush3.msra.mxu1 %v172_v12  ;;  %v160_v34 = vld [vmem:[#allocation5 + $0x80] sm:$0xff]  ;;  %v274_v35 = vld [vmem:[#allocation5 + $0x178] sm:$0xff]  ;;  %v273_v36 = vld [vmem:[#allocation5 + $0x170] sm:$0xff] }
  0x35   :  { %1080 = vmatpush3.msra.mxu0 %v71_v9  ;;  %1112 = vmatprep.subr.mxu1 %v171_v14  ;;  %v272_v37 = vld [vmem:[#allocation5 + $0x168] sm:$0xff]  ;;  %v271_v38 = vld [vmem:[#allocation5 + $0x160] sm:$0xff]  ;;  %v270_v39 = vld [vmem:[#allocation5 + $0x158] sm:$0xff] }
  0x36   :  { %1081 = vmatprep.subr.mxu0 %v70_v11  ;;  %1113 = vmatpush3.msra.mxu1 %v171_v14  ;;  %v269_v40 = vld [vmem:[#allocation5 + $0x150] sm:$0xff]  ;;  %v268_v41 = vld [vmem:[#allocation5 + $0x148] sm:$0xff]  ;;  %v267_v42 = vld [vmem:[#allocation5 + $0x140] sm:$0xff] }
  0x37   :  { %1082 = vmatpush3.msra.mxu0 %v70_v11  ;;  %1114 = vmatprep.subr.mxu1 %v170_v16  ;;  %v266_v43 = vld [vmem:[#allocation5 + $0x138] sm:$0xff]  ;;  %v265_v44 = vld [vmem:[#allocation5 + $0x130] sm:$0xff]  ;;  %v264_v45 = vld [vmem:[#allocation5 + $0x128] sm:$0xff] }
  0x38   :  { %1083 = vmatprep.subr.mxu0 %v69_v13  ;;  %1115 = vmatpush3.msra.mxu1 %v170_v16  ;;  %v263_v46 = vld [vmem:[#allocation5 + $0x120] sm:$0xff]  ;;  %v262_v54 = vld [vmem:[#allocation5 + $0x118] sm:$0xff]  ;;  %v261_v55 = vld [vmem:[#allocation5 + $0x110] sm:$0xff] }
  0x39   :  { %1084 = vmatpush3.msra.mxu0 %v69_v13  ;;  %1116 = vmatprep.subr.mxu1 %v169_v18  ;;  %v904_v47 = vld [vmem:[#allocation7] ss:$0 sm:$0xff]  ;;  %v260_v56 = vld [vmem:[#allocation5 + $0x108] sm:$0xff]  ;;  %v373_v58 = vld [vmem:[#allocation5 + $0x1f8] sm:$0xff] }
  0x3a   :  { %1085 = vmatprep.subr.mxu0 %v68_v15  ;;  %1117 = vmatpush3.msra.mxu1 %v169_v18  ;;  %v259_v57 = vld [vmem:[#allocation5 + $0x100] sm:$0xff]  ;;  %v372_v59 = vld [vmem:[#allocation5 + $0x1f0] sm:$0xff]  ;;  %v371_v60 = vld [vmem:[#allocation5 + $0x1e8] sm:$0xff] }
  0x3b   :  { %1086 = vmatpush3.msra.mxu0 %v68_v15  ;;  %1118 = vmatprep.subr.mxu1 %v168_v20  ;;  %v370_v61 = vld [vmem:[#allocation5 + $0x1e0] sm:$0xff]  ;;  %v369_v62 = vld [vmem:[#allocation5 + $0x1d8] sm:$0xff]  ;;  %v368_v63 = vld [vmem:[#allocation5 + $0x1d0] sm:$0xff] }
  0x3c   :  { %1087 = vmatprep.subr.mxu0 %v67_v17  ;;  %1119 = vmatpush3.msra.mxu1 %v168_v20  ;;  %v367_v0 = vld [vmem:[#allocation5 + $0x1c8] sm:$0xff]  ;;  %v366_v1 = vld [vmem:[#allocation5 + $0x1c0] sm:$0xff]  ;;  %v365_v2 = vld [vmem:[#allocation5 + $0x1b8] sm:$0xff] }
  0x3d   :  { %1088 = vmatpush3.msra.mxu0 %v67_v17  ;;  %1120 = vmatprep.subr.mxu1 %v167_v22  ;;  %v364_v3 = vld [vmem:[#allocation5 + $0x1b0] sm:$0xff]  ;;  %v363_v4 = vld [vmem:[#allocation5 + $0x1a8] sm:$0xff]  ;;  %v362_v5 = vld [vmem:[#allocation5 + $0x1a0] sm:$0xff] }
  0x3e   :  { %1089 = vmatprep.subr.mxu0 %v66_v19  ;;  %1121 = vmatpush3.msra.mxu1 %v167_v22  ;;  %v905_v6 = vld [vmem:[#allocation7 + $0x1] ss:$0 sm:$0xff]  ;;  %v361_v13 = vld [vmem:[#allocation5 + $0x198] sm:$0xff]  ;;  %v360_v14 = vld [vmem:[#allocation5 + $0x190] sm:$0xff] }
  0x3f   :  { %1090 = vmatpush3.msra.mxu0 %v66_v19  ;;  %1122 = vmatprep.subr.mxu1 %v166_v24  ;;  %v359_v15 = vld [vmem:[#allocation5 + $0x188] sm:$0xff]  ;;  %v358_v16 = vld [vmem:[#allocation5 + $0x180] sm:$0xff]  ;;  %v472_v17 = vld [vmem:[#allocation5 + $0x278] sm:$0xff] }
  0x40   :  { %1091 = vmatprep.subr.mxu0 %v65_v21  ;;  %1123 = vmatpush3.msra.mxu1 %v166_v24  ;;  %v471_v18 = vld [vmem:[#allocation5 + $0x270] sm:$0xff]  ;;  %v470_v19 = vld [vmem:[#allocation5 + $0x268] sm:$0xff]  ;;  %v469_v20 = vld [vmem:[#allocation5 + $0x260] sm:$0xff] }
  0x41   :  { %1092 = vmatpush3.msra.mxu0 %v65_v21  ;;  %1124 = vmatprep.subr.mxu1 %v165_v26  ;;  %v468_v21 = vld [vmem:[#allocation5 + $0x258] sm:$0xff]  ;;  %v467_v22 = vld [vmem:[#allocation5 + $0x250] sm:$0xff]  ;;  %v465_v24 = vld [vmem:[#allocation5 + $0x240] sm:$0xff] }
  0x42   :  { %1093 = vmatprep.subr.mxu0 %v64_v23  ;;  %1125 = vmatpush3.msra.mxu1 %v165_v26  ;;  %v463_v26 = vld [vmem:[#allocation5 + $0x230] sm:$0xff] }
  0x43   :  { %1094 = vmatpush3.msra.mxu0 %v64_v23  ;;  %1126 = vmatprep.subr.mxu1 %v164_v28  ;;  %v466_v23 = vld [vmem:[#allocation5 + $0x248] sm:$0xff] }
  0x44   :  { %1095 = vmatprep.subr.mxu0 %v63_v25  ;;  %1127 = vmatpush3.msra.mxu1 %v164_v28  ;;  %v461_v28 = vld [vmem:[#allocation5 + $0x220] sm:$0xff] }
  0x45   :  { %1096 = vmatpush3.msra.mxu0 %v63_v25  ;;  %1128 = vmatprep.subr.mxu1 %v163_v31  ;;  %v464_v25 = vld [vmem:[#allocation5 + $0x238] sm:$0xff] }
  0x46   :  { %1097 = vmatprep.subr.mxu0 %v62_v27  ;;  %1129 = vmatpush3.msra.mxu1 %v163_v31 }
  0x47   :  { %1098 = vmatpush3.msra.mxu0 %v62_v27  ;;  %1130 = vmatprep.subr.mxu1 %v162_v32  ;;  %v462_v27 = vld [vmem:[#allocation5 + $0x228] sm:$0xff] }
  0x48   :  { %1099 = vmatprep.subr.mxu0 %v61_v29  ;;  %1131 = vmatpush3.msra.mxu1 %v162_v32 }
  0x49   :  { %1100 = vmatpush3.msra.mxu0 %v61_v29  ;;  %1132 = vmatprep.subr.mxu1 %v161_v33  ;;  %v460_v29 = vld [vmem:[#allocation5 + $0x218] sm:$0xff] }
  0x4a   :  { %1102 = vmatmul.mubr.f32.vlgmr.msra.gmra.mxu0 %v919_v30  ;;  %1133 = vmatpush3.msra.mxu1 %v161_v33  ;;  %v906_v30 = vld [vmem:[#allocation7 + $0x2] ss:$0 sm:$0xff] }
  0x4b   :  { %1134 = vmatprep.subr.mxu1 %v160_v34  ;;  %1139 = vmatprep.subr.mxu0 %v274_v35 }
  0x4c   :  { %1135 = vmatpush3.msra.mxu1 %v160_v34  ;;  %1140 = vmatpush3.msra.mxu0 %v274_v35 }
  0x4d   :  { %1141 = vmatprep.subr.mxu0 %v273_v36  ;;  %1174 = vmatprep.subr.mxu1 %v373_v58 }
  0x4e   :  { %1142 = vmatpush3.msra.mxu0 %v273_v36 }
  0x4f   :  { %1143 = vmatprep.subr.mxu0 %v272_v37 }
  0x50   :  { %1144 = vmatpush3.msra.mxu0 %v272_v37  ;;  %v459_v37 = vld [vmem:[#allocation5 + $0x210] sm:$0xff] }
  0x51   :  { %1145 = vmatprep.subr.mxu0 %v271_v38 }
  0x52   :  { %1146 = vmatpush3.msra.mxu0 %v271_v38  ;;  %v458_v38 = vld [vmem:[#allocation5 + $0x208] sm:$0xff] }
  0x53   :  { %1147 = vmatprep.subr.mxu0 %v270_v39 }
  0x54   :  { %1148 = vmatpush3.msra.mxu0 %v270_v39  ;;  %v457_v39 = vld [vmem:[#allocation5 + $0x200] sm:$0xff] }
  0x55   :  { %1149 = vmatprep.subr.mxu0 %v269_v40 }
  0x56   :  { %1150 = vmatpush3.msra.mxu0 %v269_v40  ;;  %v571_v40 = vld [vmem:[#allocation5 + $0x2f8] sm:$0xff] }
  0x57   :  { %1151 = vmatprep.subr.mxu0 %v268_v41 }
  0x58   :  { %1152 = vmatpush3.msra.mxu0 %v268_v41  ;;  %v570_v41 = vld [vmem:[#allocation5 + $0x2f0] sm:$0xff] }
  0x59   :  { %1153 = vmatprep.subr.mxu0 %v267_v42 }
  0x5a   :  { %1154 = vmatpush3.msra.mxu0 %v267_v42  ;;  %v569_v42 = vld [vmem:[#allocation5 + $0x2e8] sm:$0xff] }
  0x5b   :  { %1155 = vmatprep.subr.mxu0 %v266_v43 }
  0x5c   :  { %1156 = vmatpush3.msra.mxu0 %v266_v43  ;;  %v568_v43 = vld [vmem:[#allocation5 + $0x2e0] sm:$0xff] }
  0x5d   :  { %1157 = vmatprep.subr.mxu0 %v265_v44 }
  0x5e   :  { %1158 = vmatpush3.msra.mxu0 %v265_v44  ;;  %v567_v44 = vld [vmem:[#allocation5 + $0x2d8] sm:$0xff] }
  0x5f   :  { %1159 = vmatprep.subr.mxu0 %v264_v45 }
  0x60   :  { %1160 = vmatpush3.msra.mxu0 %v264_v45  ;;  %v566_v45 = vld [vmem:[#allocation5 + $0x2d0] sm:$0xff] }
  0x61   :  { %1161 = vmatprep.subr.mxu0 %v263_v46 }
  0x62   :  { %1162 = vmatpush3.msra.mxu0 %v263_v46  ;;  %v565_v46 = vld [vmem:[#allocation5 + $0x2c8] sm:$0xff] }
  0x63   :  { %1163 = vmatprep.subr.mxu0 %v262_v54 }
  0x64   :  { %1164 = vmatpush3.msra.mxu0 %v262_v54 }
  0x65   :  { %1165 = vmatprep.subr.mxu0 %v261_v55 }
  0x66   :  { %1166 = vmatpush3.msra.mxu0 %v261_v55 }
  0x67   :  { %1167 = vmatprep.subr.mxu0 %v260_v56 }
  0x68   :  { %1168 = vmatpush3.msra.mxu0 %v260_v56 }
  0x69   :  { %1169 = vmatprep.subr.mxu0 %v259_v57 }
  0x6a   :  { %1170 = vmatpush3.msra.mxu0 %v259_v57  ;;  %v559_v57 = vld [vmem:[#allocation5 + $0x298] sm:$0xff] }
  0x6b   :  { %1209 = vmatprep.subr.mxu0 %v472_v17 }
 0x10a   :  { %v1103_v48 = vpop.f32.mrf.mxu0 }
 0x10b   :  { %v154_v49 = vadd.f32 %v1103_v48, %v904_v47  ;;  %v563_v48 = vld [vmem:[#allocation5 + $0x2b8] sm:$0xff] }
 0x10c   :  { %v148_v50 = vpop.f32.mrf.mxu0 }
 0x10d   :  { %v149_v51 = vadd.f32 %v904_v47, %v148_v50  ;;  %v158_v53 = vmax.f32 %v154_v49, 0.0  ;;  %v564_v47 = vld [vmem:[#allocation5 + $0x2c0] sm:$0xff]  ;;  %v562_v49 = vld [vmem:[#allocation5 + $0x2b0] sm:$0xff]  ;;  %v561_v50 = vld [vmem:[#allocation5 + $0x2a8] sm:$0xff] }
 0x10f   :  { %v157_v52 = vmax.f32 %v149_v51, 0.0  ;;  %v560_v51 = vld [vmem:[#allocation5 + $0x2a0] sm:$0xff] }
 0x111   :  { %1136 = vmatprep.mubr.f32.mxu1 %v157_v52  ;;  %v907_v52 = vld [vmem:[#allocation7 + $0x3] ss:$0 sm:$0xff] }
 0x112   :  { %1137 = vmatmul.mubr.f32.vlgmr.msra.gmra.mxu1 %v158_v53 }
 0x113   :  { %1175 = vmatpush3.msra.mxu1 %v373_v58  ;;  %v558_v58 = vld [vmem:[#allocation5 + $0x290] sm:$0xff] }
 0x114   :  { %1176 = vmatprep.subr.mxu1 %v372_v59 }
 0x115   :  { %1177 = vmatpush3.msra.mxu1 %v372_v59  ;;  %v557_v59 = vld [vmem:[#allocation5 + $0x288] sm:$0xff] }
 0x116   :  { %1178 = vmatprep.subr.mxu1 %v371_v60 }
 0x117   :  { %1179 = vmatpush3.msra.mxu1 %v371_v60  ;;  %v556_v60 = vld [vmem:[#allocation5 + $0x280] sm:$0xff] }
 0x118   :  { %1180 = vmatprep.subr.mxu1 %v370_v61 }
 0x119   :  { %1181 = vmatpush3.msra.mxu1 %v370_v61  ;;  %v670_v61 = vld [vmem:[#allocation5 + $0x378] sm:$0xff] }
 0x11a   :  { %1182 = vmatprep.subr.mxu1 %v369_v62 }
 0x11b   :  { %1183 = vmatpush3.msra.mxu1 %v369_v62  ;;  %v669_v62 = vld [vmem:[#allocation5 + $0x370] sm:$0xff] }
 0x11c   :  { %1184 = vmatprep.subr.mxu1 %v368_v63 }
 0x11d   :  { %1185 = vmatpush3.msra.mxu1 %v368_v63  ;;  %v668_v63 = vld [vmem:[#allocation5 + $0x368] sm:$0xff] }
 0x11e   :  { %1186 = vmatprep.subr.mxu1 %v367_v0 }
 0x11f   :  { %1187 = vmatpush3.msra.mxu1 %v367_v0  ;;  %v667_v0 = vld [vmem:[#allocation5 + $0x360] sm:$0xff] }
 0x120   :  { %1188 = vmatprep.subr.mxu1 %v366_v1 }
 0x121   :  { %1189 = vmatpush3.msra.mxu1 %v366_v1  ;;  %v666_v1 = vld [vmem:[#allocation5 + $0x358] sm:$0xff] }
 0x122   :  { %1190 = vmatprep.subr.mxu1 %v365_v2 }
 0x123   :  { %1191 = vmatpush3.msra.mxu1 %v365_v2  ;;  %v665_v2 = vld [vmem:[#allocation5 + $0x350] sm:$0xff] }
 0x124   :  { %1192 = vmatprep.subr.mxu1 %v364_v3 }
 0x125   :  { %1193 = vmatpush3.msra.mxu1 %v364_v3  ;;  %v664_v3 = vld [vmem:[#allocation5 + $0x348] sm:$0xff] }
 0x126   :  { %1194 = vmatprep.subr.mxu1 %v363_v4 }
 0x127   :  { %1195 = vmatpush3.msra.mxu1 %v363_v4  ;;  %v663_v4 = vld [vmem:[#allocation5 + $0x340] sm:$0xff] }
 0x128   :  { %1196 = vmatprep.subr.mxu1 %v362_v5 }
 0x129   :  { %1197 = vmatpush3.msra.mxu1 %v362_v5  ;;  %v662_v5 = vld [vmem:[#allocation5 + $0x338] sm:$0xff] }
 0x12a   :  { %1198 = vmatprep.subr.mxu1 %v361_v13 }
 0x12b   :  { %1199 = vmatpush3.msra.mxu1 %v361_v13 }
 0x12c   :  { %1200 = vmatprep.subr.mxu1 %v360_v14 }
 0x12d   :  { %1201 = vmatpush3.msra.mxu1 %v360_v14 }
 0x12e   :  { %1202 = vmatprep.subr.mxu1 %v359_v15 }
 0x12f   :  { %1203 = vmatpush3.msra.mxu1 %v359_v15 }
 0x130   :  { %1204 = vmatprep.subr.mxu1 %v358_v16 }
 0x131   :  { %1205 = vmatpush3.msra.mxu1 %v358_v16  ;;  %v658_v16 = vld [vmem:[#allocation5 + $0x318] sm:$0xff] }
 0x132   :  { %1244 = vmatprep.subr.mxu1 %v571_v40 }
 0x1d2   :  { %v1138_v7 = vpop.f32.mrf.mxu1 }
 0x1d3   :  { %v253_v8 = vadd.f32 %v1138_v7, %v905_v6  ;;  %v660_v7 = vld [vmem:[#allocation5 + $0x328] sm:$0xff] }
 0x1d4   :  { %v247_v9 = vpop.f32.mrf.mxu1 }
 0x1d5   :  { %v248_v10 = vadd.f32 %v905_v6, %v247_v9  ;;  %v257_v12 = vmax.f32 %v253_v8, 0.0  ;;  %v661_v6 = vld [vmem:[#allocation5 + $0x330] sm:$0xff]  ;;  %v659_v8 = vld [vmem:[#allocation5 + $0x320] sm:$0xff] }
 0x1d6   :  { %v908_v9 = vld [vmem:[#allocation7 + $0x4] ss:$0 sm:$0xff] }
 0x1d7   :  { %v256_v11 = vmax.f32 %v248_v10, 0.0 }
 0x1d9   :  { %1171 = vmatprep.mubr.f32.mxu0 %v256_v11 }
 0x1da   :  { %1172 = vmatmul.mubr.f32.vlgmr.msra.gmra.mxu0 %v257_v12 }
 0x1db   :  { %1210 = vmatpush3.msra.mxu0 %v472_v17  ;;  %v657_v17 = vld [vmem:[#allocation5 + $0x310] sm:$0xff] }
 0x1dc   :  { %1211 = vmatprep.subr.mxu0 %v471_v18 }
 0x1dd   :  { %1212 = vmatpush3.msra.mxu0 %v471_v18  ;;  %v656_v18 = vld [vmem:[#allocation5 + $0x308] sm:$0xff] }
 0x1de   :  { %1213 = vmatprep.subr.mxu0 %v470_v19 }
 0x1df   :  { %1214 = vmatpush3.msra.mxu0 %v470_v19  ;;  %v655_v19 = vld [vmem:[#allocation5 + $0x300] sm:$0xff] }
 0x1e0   :  { %1215 = vmatprep.subr.mxu0 %v469_v20 }
 0x1e1   :  { %1216 = vmatpush3.msra.mxu0 %v469_v20  ;;  %v769_v20 = vld [vmem:[#allocation5 + $0x3f8] sm:$0xff] }
 0x1e2   :  { %1217 = vmatprep.subr.mxu0 %v468_v21 }
 0x1e3   :  { %1218 = vmatpush3.msra.mxu0 %v468_v21  ;;  %v768_v21 = vld [vmem:[#allocation5 + $0x3f0] sm:$0xff] }
 0x1e4   :  { %1219 = vmatprep.subr.mxu0 %v467_v22 }
 0x1e5   :  { %1220 = vmatpush3.msra.mxu0 %v467_v22  ;;  %v767_v22 = vld [vmem:[#allocation5 + $0x3e8] sm:$0xff] }
 0x1e6   :  { %1221 = vmatprep.subr.mxu0 %v466_v23 }
 0x1e7   :  { %1222 = vmatpush3.msra.mxu0 %v466_v23  ;;  %v766_v23 = vld [vmem:[#allocation5 + $0x3e0] sm:$0xff] }
 0x1e8   :  { %1223 = vmatprep.subr.mxu0 %v465_v24 }
 0x1e9   :  { %1224 = vmatpush3.msra.mxu0 %v465_v24  ;;  %v765_v24 = vld [vmem:[#allocation5 + $0x3d8] sm:$0xff] }
 0x1ea   :  { %1225 = vmatprep.subr.mxu0 %v464_v25 }
 0x1eb   :  { %1226 = vmatpush3.msra.mxu0 %v464_v25  ;;  %v764_v25 = vld [vmem:[#allocation5 + $0x3d0] sm:$0xff] }
 0x1ec   :  { %1227 = vmatprep.subr.mxu0 %v463_v26 }
 0x1ed   :  { %1228 = vmatpush3.msra.mxu0 %v463_v26  ;;  %v763_v26 = vld [vmem:[#allocation5 + $0x3c8] sm:$0xff] }
 0x1ee   :  { %1229 = vmatprep.subr.mxu0 %v462_v27 }
 0x1ef   :  { %1230 = vmatpush3.msra.mxu0 %v462_v27  ;;  %v762_v27 = vld [vmem:[#allocation5 + $0x3c0] sm:$0xff] }
 0x1f0   :  { %1231 = vmatprep.subr.mxu0 %v461_v28 }
 0x1f1   :  { %1232 = vmatpush3.msra.mxu0 %v461_v28  ;;  %v761_v28 = vld [vmem:[#allocation5 + $0x3b8] sm:$0xff] }
 0x1f2   :  { %1233 = vmatprep.subr.mxu0 %v460_v29 }
 0x1f3   :  { %1234 = vmatpush3.msra.mxu0 %v460_v29  ;;  %v760_v29 = vld [vmem:[#allocation5 + $0x3b0] sm:$0xff] }
 0x1f4   :  { %1235 = vmatprep.subr.mxu0 %v459_v37 }
 0x1f5   :  { %1236 = vmatpush3.msra.mxu0 %v459_v37 }
 0x1f6   :  { %1237 = vmatprep.subr.mxu0 %v458_v38 }
 0x1f7   :  { %1238 = vmatpush3.msra.mxu0 %v458_v38 }
 0x1f8   :  { %1239 = vmatprep.subr.mxu0 %v457_v39 }
 0x1f9   :  { %1240 = vmatpush3.msra.mxu0 %v457_v39  ;;  %v757_v39 = vld [vmem:[#allocation5 + $0x398] sm:$0xff] }
 0x1fa   :  { %1279 = vmatprep.subr.mxu0 %v670_v61 }
 0x29a   :  { %v1173_v31 = vpop.f32.mrf.mxu0 }
 0x29b   :  { %v352_v32 = vadd.f32 %v1173_v31, %v906_v30  ;;  %v758_v31 = vld [vmem:[#allocation5 + $0x3a0] sm:$0xff] }
 0x29c   :  { %v346_v33 = vpop.f32.mrf.mxu0 }
 0x29d   :  { %v347_v34 = vadd.f32 %v906_v30, %v346_v33  ;;  %v356_v36 = vmax.f32 %v352_v32, 0.0  ;;  %v759_v30 = vld [vmem:[#allocation5 + $0x3a8] sm:$0xff]  ;;  %v909_v32 = vld [vmem:[#allocation7 + $0x5] ss:$0 sm:$0xff] }
 0x29f   :  { %v355_v35 = vmax.f32 %v347_v34, 0.0 }
 0x2a1   :  { %1206 = vmatprep.mubr.f32.mxu1 %v355_v35 }
 0x2a2   :  { %1207 = vmatmul.mubr.f32.vlgmr.msra.gmra.mxu1 %v356_v36 }
 0x2a3   :  { %1245 = vmatpush3.msra.mxu1 %v571_v40  ;;  %v756_v40 = vld [vmem:[#allocation5 + $0x390] sm:$0xff] }
 0x2a4   :  { %1246 = vmatprep.subr.mxu1 %v570_v41 }
 0x2a5   :  { %1247 = vmatpush3.msra.mxu1 %v570_v41  ;;  %v755_v41 = vld [vmem:[#allocation5 + $0x388] sm:$0xff] }
 0x2a6   :  { %1248 = vmatprep.subr.mxu1 %v569_v42 }
 0x2a7   :  { %1249 = vmatpush3.msra.mxu1 %v569_v42  ;;  %v754_v42 = vld [vmem:[#allocation5 + $0x380] sm:$0xff] }
 0x2a8   :  { %1250 = vmatprep.subr.mxu1 %v568_v43 }
 0x2a9   :  { %1251 = vmatpush3.msra.mxu1 %v568_v43  ;;  %v910_v43 = vld [vmem:[#allocation7 + $0x6] ss:$0 sm:$0xff] }
 0x2aa   :  { %1252 = vmatprep.subr.mxu1 %v567_v44 }
 0x2ab   :  { %1253 = vmatpush3.msra.mxu1 %v567_v44 }
 0x2ac   :  { %1254 = vmatprep.subr.mxu1 %v566_v45 }
 0x2ad   :  { %1255 = vmatpush3.msra.mxu1 %v566_v45 }
 0x2ae   :  { %1256 = vmatprep.subr.mxu1 %v565_v46 }
 0x2af   :  { %1257 = vmatpush3.msra.mxu1 %v565_v46 }
 0x2b0   :  { %1258 = vmatprep.subr.mxu1 %v564_v47 }
 0x2b1   :  { %1259 = vmatpush3.msra.mxu1 %v564_v47 }
 0x2b2   :  { %1260 = vmatprep.subr.mxu1 %v563_v48 }
 0x2b3   :  { %1261 = vmatpush3.msra.mxu1 %v563_v48 }
 0x2b4   :  { %1262 = vmatprep.subr.mxu1 %v562_v49 }
 0x2b5   :  { %1263 = vmatpush3.msra.mxu1 %v562_v49 }
 0x2b6   :  { %1264 = vmatprep.subr.mxu1 %v561_v50 }
 0x2b7   :  { %1265 = vmatpush3.msra.mxu1 %v561_v50 }
 0x2b8   :  { %1266 = vmatprep.subr.mxu1 %v560_v51 }
 0x2b9   :  { %1267 = vmatpush3.msra.mxu1 %v560_v51 }
 0x2ba   :  { %1268 = vmatprep.subr.mxu1 %v559_v57 }
 0x2bb   :  { %1269 = vmatpush3.msra.mxu1 %v559_v57 }
 0x2bc   :  { %1270 = vmatprep.subr.mxu1 %v558_v58 }
 0x2bd   :  { %1271 = vmatpush3.msra.mxu1 %v558_v58 }
 0x2be   :  { %1272 = vmatprep.subr.mxu1 %v557_v59 }
 0x2bf   :  { %1273 = vmatpush3.msra.mxu1 %v557_v59 }
 0x2c0   :  { %1274 = vmatprep.subr.mxu1 %v556_v60 }
 0x2c1   :  { %1275 = vmatpush3.msra.mxu1 %v556_v60 }
 0x2c2   :  { %1314 = vmatprep.subr.mxu1 %v769_v20 }
 0x362   :  { %v1208_v53 = vpop.f32.mrf.mxu1 }
 0x363   :  { %v451_v54 = vadd.f32 %v1208_v53, %v907_v52 }
 0x364   :  { %v445_v55 = vpop.f32.mrf.mxu1 }
 0x365   :  { %455 = vst [vmem:[#allocation8 + $0x8] sm:$0xff] %v451_v54  ;;  %v446_v56 = vadd.f32 %v907_v52, %v445_v55 }
 0x367   :  { %454 = vst [vmem:[#allocation8] sm:$0xff] %v446_v56  ;;  %1241 = vmatprep.mubr.f32.mxu0 %v446_v56 }
 0x368   :  { %1242 = vmatmul.mubr.f32.vlgmr.msra.gmra.mxu0 %v451_v54 }
 0x369   :  { %1280 = vmatpush3.msra.mxu0 %v670_v61 }
 0x36a   :  { %1281 = vmatprep.subr.mxu0 %v669_v62 }
 0x36b   :  { %1282 = vmatpush3.msra.mxu0 %v669_v62 }
 0x36c   :  { %1283 = vmatprep.subr.mxu0 %v668_v63 }
 0x36d   :  { %1284 = vmatpush3.msra.mxu0 %v668_v63 }
 0x36e   :  { %1285 = vmatprep.subr.mxu0 %v667_v0 }
 0x36f   :  { %1286 = vmatpush3.msra.mxu0 %v667_v0 }
 0x370   :  { %1287 = vmatprep.subr.mxu0 %v666_v1 }
 0x371   :  { %1288 = vmatpush3.msra.mxu0 %v666_v1 }
 0x372   :  { %1289 = vmatprep.subr.mxu0 %v665_v2 }
 0x373   :  { %1290 = vmatpush3.msra.mxu0 %v665_v2 }
 0x374   :  { %1291 = vmatprep.subr.mxu0 %v664_v3 }
 0x375   :  { %1292 = vmatpush3.msra.mxu0 %v664_v3 }
 0x376   :  { %1293 = vmatprep.subr.mxu0 %v663_v4 }
 0x377   :  { %1294 = vmatpush3.msra.mxu0 %v663_v4 }
 0x378   :  { %1295 = vmatprep.subr.mxu0 %v662_v5 }
 0x379   :  { %1296 = vmatpush3.msra.mxu0 %v662_v5 }
 0x37a   :  { %1297 = vmatprep.subr.mxu0 %v661_v6 }
 0x37b   :  { %1298 = vmatpush3.msra.mxu0 %v661_v6 }
 0x37c   :  { %1299 = vmatprep.subr.mxu0 %v660_v7 }
 0x37d   :  { %1300 = vmatpush3.msra.mxu0 %v660_v7 }
 0x37e   :  { %1301 = vmatprep.subr.mxu0 %v659_v8 }
 0x37f   :  { %1302 = vmatpush3.msra.mxu0 %v659_v8 }
 0x380   :  { %1303 = vmatprep.subr.mxu0 %v658_v16 }
 0x381   :  { %1304 = vmatpush3.msra.mxu0 %v658_v16 }
 0x382   :  { %1305 = vmatprep.subr.mxu0 %v657_v17 }
 0x383   :  { %1306 = vmatpush3.msra.mxu0 %v657_v17 }
 0x384   :  { %1307 = vmatprep.subr.mxu0 %v656_v18 }
 0x385   :  { %1308 = vmatpush3.msra.mxu0 %v656_v18 }
 0x386   :  { %1309 = vmatprep.subr.mxu0 %v655_v19 }
 0x387   :  { %1310 = vmatpush3.msra.mxu0 %v655_v19 }
 0x428   :  { %v1243_v10 = vpop.f32.mrf.mxu0 }
 0x429   :  { %v550_v11 = vadd.f32 %v1243_v10, %v908_v9 }
 0x42a   :  { %v544_v12 = vpop.f32.mrf.mxu0 }
 0x42b   :  { %v545_v13 = vadd.f32 %v908_v9, %v544_v12  ;;  %v554_v15 = vmax.f32 %v550_v11, 0.0 }
 0x42d   :  { %v553_v14 = vmax.f32 %v545_v13, 0.0 }
 0x42f   :  { %1276 = vmatprep.mubr.f32.mxu1 %v553_v14 }
 0x430   :  { %1277 = vmatmul.mubr.f32.vlgmr.msra.gmra.mxu1 %v554_v15 }
 0x431   :  { %1315 = vmatpush3.msra.mxu1 %v769_v20 }
 0x432   :  { %1316 = vmatprep.subr.mxu1 %v768_v21 }
 0x433   :  { %1317 = vmatpush3.msra.mxu1 %v768_v21 }
 0x434   :  { %1318 = vmatprep.subr.mxu1 %v767_v22 }
 0x435   :  { %1319 = vmatpush3.msra.mxu1 %v767_v22 }
 0x436   :  { %1320 = vmatprep.subr.mxu1 %v766_v23 }
 0x437   :  { %1321 = vmatpush3.msra.mxu1 %v766_v23 }
 0x438   :  { %1322 = vmatprep.subr.mxu1 %v765_v24 }
 0x439   :  { %1323 = vmatpush3.msra.mxu1 %v765_v24 }
 0x43a   :  { %1324 = vmatprep.subr.mxu1 %v764_v25 }
 0x43b   :  { %1325 = vmatpush3.msra.mxu1 %v764_v25 }
 0x43c   :  { %1326 = vmatprep.subr.mxu1 %v763_v26 }
 0x43d   :  { %1327 = vmatpush3.msra.mxu1 %v763_v26 }
 0x43e   :  { %1328 = vmatprep.subr.mxu1 %v762_v27 }
 0x43f   :  { %1329 = vmatpush3.msra.mxu1 %v762_v27 }
 0x440   :  { %1330 = vmatprep.subr.mxu1 %v761_v28 }
 0x441   :  { %1331 = vmatpush3.msra.mxu1 %v761_v28 }
 0x442   :  { %1332 = vmatprep.subr.mxu1 %v760_v29 }
 0x443   :  { %1333 = vmatpush3.msra.mxu1 %v760_v29 }
 0x444   :  { %1334 = vmatprep.subr.mxu1 %v759_v30 }
 0x445   :  { %1335 = vmatpush3.msra.mxu1 %v759_v30 }
 0x446   :  { %1336 = vmatprep.subr.mxu1 %v758_v31 }
 0x447   :  { %1337 = vmatpush3.msra.mxu1 %v758_v31 }
 0x448   :  { %1338 = vmatprep.subr.mxu1 %v757_v39 }
 0x449   :  { %1339 = vmatpush3.msra.mxu1 %v757_v39 }
 0x44a   :  { %1340 = vmatprep.subr.mxu1 %v756_v40 }
 0x44b   :  { %1341 = vmatpush3.msra.mxu1 %v756_v40 }
 0x44c   :  { %1342 = vmatprep.subr.mxu1 %v755_v41 }
 0x44d   :  { %1343 = vmatpush3.msra.mxu1 %v755_v41 }
 0x44e   :  { %1344 = vmatprep.subr.mxu1 %v754_v42 }
 0x44f   :  { %1345 = vmatpush3.msra.mxu1 %v754_v42 }
 0x4f0   :  { %v1278_v33 = vpop.f32.mrf.mxu1 }
 0x4f1   :  { %v649_v34 = vadd.f32 %v1278_v33, %v909_v32 }
 0x4f2   :  { %v643_v35 = vpop.f32.mrf.mxu1 }
 0x4f3   :  { %v644_v36 = vadd.f32 %v909_v32, %v643_v35  ;;  %v653_v38 = vmax.f32 %v649_v34, 0.0 }
 0x4f5   :  { %v652_v37 = vmax.f32 %v644_v36, 0.0 }
 0x4f7   :  { %1311 = vmatprep.mubr.f32.mxu0 %v652_v37 }
 0x4f8   :  { %1312 = vmatmul.mubr.f32.vlgmr.msra.gmra.mxu0 %v653_v38 }
 0x5b8   :  { %v1313_v44 = vpop.f32.mrf.mxu0 }
 0x5b9   :  { %v748_v45 = vadd.f32 %v1313_v44, %v910_v43 }
 0x5ba   :  { %v742_v46 = vpop.f32.mrf.mxu0 }
 0x5bb   :  { %v743_v47 = vadd.f32 %v910_v43, %v742_v46  ;;  %v752_v49 = vmax.f32 %v748_v45, 0.0 }
 0x5bd   :  { %v751_v48 = vmax.f32 %v743_v47, 0.0 }
 0x5bf   :  { %1346 = vmatprep.mubr.f32.mxu1 %v751_v48 }
 0x5c0   :  { %1347 = vmatmul.mubr.f32.vlgmr.msra.gmra.mxu1 %v752_v49 }
 0x5c1   :  { %1437 = shalt.err (!%p1434_p5)
}
 0x5c2   :  { %881 = dma.vmem_to_hbm [thread:$0]  %s876_s2, 256, %s1542_s3, [#allocation4], %s1475_s18, %s1475_s18, %s1476_s19   ;;  %v911_v50 = vld [vmem:[#allocation7 + $0x7] ss:$0 sm:$0xff] }
 0x5c3   :  { %s1482_s10 = smov [#allocation9]  }
 0x5c4   :  { %s887_s11 = sshll.u32 %s1482_s10, 4  ;;  %s888_s11 = int_to_ptr.vmem [resolvable:$true] %s887_s11 }
 0x5c5   :  { %s1446_s3 = scalar_lea.vmem %s888_s11, 128  ;;  %p1451_p7 = scmp.lt.s32.totalorder %s888_s11, %s888_s11 }
 0x5c6   :  { %p1447_p6 = scmp.ne.s32.totalorder %s888_s11, %s1446_s3  ;;  %p1452_p8 = scmp.lt.s32.totalorder %s1446_s3, %s1446_s3 }
 0x5c8   :  { %p1453_p9 = por %p1452_p8, %p1451_p7 }
 0x5ca   :  { %p1454_p10 = pnand %p1453_p9, %p1447_p6 }
 0x680   :  { %v1348_v51 = vpop.f32.mrf.mxu1 }
 0x681   :  { %v847_v52 = vadd.f32 %v1348_v51, %v911_v50 }
 0x682   :  { %v841_v53 = vpop.f32.mrf.mxu1 }
 0x683   :  { %v851_v54 = vsub.f32 0.0, %v847_v52  ;;  %v842_v55 = vadd.f32 %v911_v50, %v841_v53 }
 0x685   :  { %v854_v56 = vmul.f32 1.442695, %v851_v54  ;;  %v850_v57 = vsub.f32 0.0, %v842_v55 }
 0x687   :  { %1358 = vpow2.f32 %v854_v56  ;;  %v852_v58 = vmul.f32 1.442695, %v850_v57 }
 0x689   :  { %1360 = vpow2.f32 %v852_v58 }
 0x694   :  { %v1359_v59 = vpop.eup %1358 }
 0x695   :  { %v857_v60 = vadd.f32 1.0, %v1359_v59 }
 0x696   :  { %v1361_v61 = vpop.eup %1360 }
 0x697   :  { %v856_v62 = vadd.f32 1.0, %v1361_v61  ;;  %1362 = vrcp.f32 %v857_v60 }
 0x699   :  { %1364 = vrcp.f32 %v856_v62 }
 0x6a4   :  { %v1363_v63 = vpop.eup %1362 }
 0x6a6   :  { %v1365_v0 = vpop.eup %1364 }
 0x6a7   :  { %v923_v1 = vpack.c.bf16 %v1363_v63, %v1365_v0 }
 0x6a9   :  { %924 = vst [vmem:[#allocation9] sm:$0xff] %v923_v1  }
 0x6aa   :  { %1457 = shalt.err (!%p1454_p10)
}
 0x6ab   :  { %893 = dma.vmem_to_hbm [thread:$0]  %s888_s11, 128, %s1543_s4, [#allocation10], %s1478_s25, %s1478_s25, %s1479_s26  }
 0x6ac   :  { %1470 = dma.done.wait [#allocation4], 256  }
 0x6ad   :  { %1471 = vsyncadd [#allocation4], 4294967040 }
 0x6ae   :  { %1472 = dma.done.wait [#allocation10], 128  }
 0x6af   :  { %1473 = vsyncadd [#allocation10], 4294967168 }
 0x6b0   :  { %900 = vsyncpa [#allocation3], 1 }
 0x6b1   :  { %901 = vsyncpa [#allocation6], 1 }
 0x6b2   :  { %902 = vsyncpa [#allocation4], 1 }
 0x6b3   :  { %903 = vsyncpa [#allocation10], 1 }

</bundles_post_ra>
